<compile_context>
chip_gen: v5e
topology: v5e:2x2
jax: 0.10.0
libtpu: 0.0.40
codegen_flags: <defaults>
</compile_context>

<pallas_src>
import jax
import jax.numpy as jnp
from jax.experimental import pallas as pl
from jax.experimental.pallas import tpu as pltpu

HID1, HID2 = 64, 32
TB_CAP = 4096       # max batch rows per tile (VMEM stays well under limits)


def _round_up(n, m):
    return ((n + m - 1) // m) * m


def _choose_tb(B, cap=TB_CAP):
    """Tile the batch into >=2 tiles when it is big (megacore on v7x), with a
    sublane-aligned (multiple of 8) tile size capped for VMEM."""
    half = _round_up(max(pl.cdiv(B, 2), 1), 8)
    return max(8, min(cap, half))


def qnetwork_kernel(x_ref, w1_ref, b1_ref, w2_ref, b2_ref, w3_ref, b3_ref, o_ref):
    """Fused forward for one batch tile: relu(relu(x@W1+b1)@W2+b2)@W3+b3."""
    h1 = jnp.dot(x_ref[...], w1_ref[...], preferred_element_type=jnp.float32) + b1_ref[...]
    h1 = jnp.maximum(h1, 0.0)
    h2 = jnp.dot(h1, w2_ref[...], preferred_element_type=jnp.float32) + b2_ref[...]
    h2 = jnp.maximum(h2, 0.0)
    out = jnp.dot(h2, w3_ref[...], preferred_element_type=jnp.float32) + b3_ref[...]
    o_ref[...] = out.astype(o_ref.dtype)


def qnetwork_forward(x, params, tb=None):
    """x: (B, state_size) float32; params: dict of w1,b1,w2,b2,w3,b3 (see layout above)."""
    w1, b1 = params["w1"], params["b1"]
    w2, b2 = params["w2"], params["b2"]
    w3, b3 = params["w3"], params["b3"]

    B, S = x.shape
    A = w3.shape[1]

    TB = tb if tb is not None else _choose_tb(B)
    grid = (pl.cdiv(B, TB),)   # ragged last tile handled by Pallas (rows independent)

    # VMEM budget: resident weights (x2 headroom for possible double-buffering),
    # double-buffered x/out tiles, in-kernel intermediates, + Mosaic scratch.
    dt = 4
    weight_bytes = dt * (S * HID1 + HID1 + HID1 * HID2 + HID2 + HID2 * A + A)
    io_bytes = 2 * TB * S * dt + 2 * TB * A * dt          # double-buffered x / out tiles
    inter_bytes = TB * (HID1 + HID2 + A) * dt             # h1 / h2 / out accumulators
    vmem_limit = 2 * weight_bytes + io_bytes + inter_bytes + (2 << 20)

    resident = lambda a: pl.BlockSpec(a.shape, lambda i: (0, 0))  # weights/biases stay in VMEM

    out = pl.pallas_call(
        qnetwork_kernel,
        out_shape=jax.ShapeDtypeStruct((B, A), jnp.float32),
        grid=grid,
        in_specs=[
            pl.BlockSpec((TB, S), lambda i: (i, 0)),   # x: streamed per batch tile
            resident(w1), resident(b1),
            resident(w2), resident(b2),
            resident(w3), resident(b3),
        ],
        out_specs=pl.BlockSpec((TB, A), lambda i: (i, 0)),   # last dim == full dim A
        compiler_params=pltpu.CompilerParams(
            dimension_semantics=("parallel",),   # megacore sharding on v7x
            vmem_limit_bytes=int(vmem_limit),
        ),
    )(x, w1, b1, w2, b2, w3, b3)

    return out


def init_qnetwork_params(key, state_size, action_size):
    """Deterministic init mimicking torch.nn.Linear default:
    U(-1/sqrt(fan_in), 1/sqrt(fan_in)) for both weights and biases."""
    dims = [(state_size, HID1), (HID1, HID2), (HID2, action_size)]
    params = {}
    for i, (fan_in, fan_out) in enumerate(dims, start=1):
        key, kw, kb = jax.random.split(key, 3)
        bound = 1.0 / jnp.sqrt(jnp.float32(fan_in))
        params[f"w{i}"] = jax.random.uniform(
            kw, (fan_in, fan_out), jnp.float32, minval=-bound, maxval=bound
        )
        params[f"b{i}"] = jax.random.uniform(
            kb, (1, fan_out), jnp.float32, minval=-bound, maxval=bound
        )
    return params


def qnetwork_reference(x, params):
    """Pure-JAX reference for correctness checking."""
    h1 = jnp.maximum(x @ params["w1"] + params["b1"], 0.0)
    h2 = jnp.maximum(h1 @ params["w2"] + params["b2"], 0.0)
    return h2 @ params["w3"] + params["b3"]


if __name__ == "__main__":
    key = jax.random.PRNGKey(0)
    key, k_params, k_x_small, k_x_odd, k_x_big = jax.random.split(key, 5)

    state_size = 8      # small synthetic state dim
    action_size = 4     # small synthetic action dim
    params = init_qnetwork_params(k_params, state_size, action_size)

    # Small per-step-inference batch (single grid tile).
    x_small = jax.random.normal(k_x_small, (8, state_size), dtype=jnp.float32)
    out_small = jax.block_until_ready(qnetwork_forward(x_small, params))
    ref_small = qnetwork_reference(x_small, params)
    assert out_small.shape == (8, action_size), out_small.shape
    assert jnp.allclose(out_small, ref_small, atol=1e-5, rtol=1e-5), "small-batch mismatch"

    # Non-multiple-of-8 batch: exercises the fully ragged (masked-store) path.
    x_odd = jax.random.normal(k_x_odd, (37, state_size), dtype=jnp.float32)
    out_odd = jax.block_until_ready(qnetwork_forward(x_odd, params))
    ref_odd = qnetwork_reference(x_odd, params)
    assert out_odd.shape == (37, action_size), out_odd.shape
    assert jnp.allclose(out_odd, ref_odd, atol=1e-5, rtol=1e-5), "odd-batch mismatch"

    # Training/replay-buffer-style batch: 2 grid steps (256-row tiles), with a
    # ragged last tile (no wrapper-side padding or slicing).
    x_big = jax.random.normal(k_x_big, (500, state_size), dtype=jnp.float32)
    out_big = jax.block_until_ready(qnetwork_forward(x_big, params))
    ref_big = qnetwork_reference(x_big, params)
    assert out_big.shape == (500, action_size), out_big.shape
    assert jnp.allclose(out_big, ref_big, atol=1e-5, rtol=1e-5), "large-batch mismatch"

    print("KERNEL_OK")
</pallas_src>

<mosaic_0001>
module attributes {stable_mosaic.version = 11 : i64} {
  func.func @qnetwork_kernel(%arg0: i32, %arg1: memref<8x8xf32, #tpu.memory_space<vmem>>, %arg2: memref<8x64xf32, #tpu.memory_space<vmem>>, %arg3: memref<1x64xf32, #tpu.memory_space<vmem>>, %arg4: memref<64x32xf32, #tpu.memory_space<vmem>>, %arg5: memref<1x32xf32, #tpu.memory_space<vmem>>, %arg6: memref<32x4xf32, #tpu.memory_space<vmem>>, %arg7: memref<1x4xf32, #tpu.memory_space<vmem>>, %arg8: memref<8x4xf32, #tpu.memory_space<vmem>>) attributes {dimension_semantics = [#tpu.dimension_semantics<parallel>], iteration_bounds = array<i64: 1>, scalar_prefetch = 0 : i64, scratch_operands = 0 : i64, tpu.core_type = #tpu.core_type<tc>, window_params = [{transform_indices = @transform_0, window_bounds = array<i64: 8, 8>}, {pipeline_mode = #tpu.pipeline_mode<synchronous>, transform_indices = @transform_1, window_bounds = array<i64: 8, 64>}, {pipeline_mode = #tpu.pipeline_mode<synchronous>, transform_indices = @transform_2, window_bounds = array<i64: 1, 64>}, {pipeline_mode = #tpu.pipeline_mode<synchronous>, transform_indices = @transform_3, window_bounds = array<i64: 64, 32>}, {pipeline_mode = #tpu.pipeline_mode<synchronous>, transform_indices = @transform_4, window_bounds = array<i64: 1, 32>}, {pipeline_mode = #tpu.pipeline_mode<synchronous>, transform_indices = @transform_5, window_bounds = array<i64: 32, 4>}, {pipeline_mode = #tpu.pipeline_mode<synchronous>, transform_indices = @transform_6, window_bounds = array<i64: 1, 4>}, {transform_indices = @transform_7, window_bounds = array<i64: 8, 4>}]} {
    %c0 = arith.constant 0 : index
    %c0_0 = arith.constant 0 : index
    %0 = vector.load %arg1[%c0, %c0_0] : memref<8x8xf32, #tpu.memory_space<vmem>>, vector<8x8xf32>
    %c0_1 = arith.constant 0 : index
    %c0_2 = arith.constant 0 : index
    %1 = vector.load %arg2[%c0_1, %c0_2] : memref<8x64xf32, #tpu.memory_space<vmem>>, vector<8x64xf32>
    %cst = arith.constant dense<0.000000e+00> : vector<8x64xf32>
    %2 = tpu.matmul %0, %1, %cst {dimension_numbers = #tpu.dot_dimension_numbers<[1], [0], [0], [1], [0, 0, 1, 1], [], []>} : vector<8x8xf32>, vector<8x64xf32>, vector<8x64xf32> -> vector<8x64xf32>
    %c0_3 = arith.constant 0 : index
    %c0_4 = arith.constant 0 : index
    %3 = vector.load %arg3[%c0_3, %c0_4] : memref<1x64xf32, #tpu.memory_space<vmem>>, vector<1x64xf32>
    %4 = vector.broadcast %3 : vector<1x64xf32> to vector<8x64xf32>
    %5 = arith.addf %2, %4 : vector<8x64xf32>
    %cst_5 = arith.constant 0.000000e+00 : f32
    %6 = vector.broadcast %cst_5 : f32 to vector<8x64xf32>
    %7 = arith.maximumf %5, %6 : vector<8x64xf32>
    %c0_6 = arith.constant 0 : index
    %c0_7 = arith.constant 0 : index
    %8 = vector.load %arg4[%c0_6, %c0_7] : memref<64x32xf32, #tpu.memory_space<vmem>>, vector<64x32xf32>
    %cst_8 = arith.constant dense<0.000000e+00> : vector<8x32xf32>
    %9 = tpu.matmul %7, %8, %cst_8 {dimension_numbers = #tpu.dot_dimension_numbers<[1], [0], [0], [1], [0, 0, 1, 1], [], []>} : vector<8x64xf32>, vector<64x32xf32>, vector<8x32xf32> -> vector<8x32xf32>
    %c0_9 = arith.constant 0 : index
    %c0_10 = arith.constant 0 : index
    %10 = vector.load %arg5[%c0_9, %c0_10] : memref<1x32xf32, #tpu.memory_space<vmem>>, vector<1x32xf32>
    %11 = vector.broadcast %10 : vector<1x32xf32> to vector<8x32xf32>
    %12 = arith.addf %9, %11 : vector<8x32xf32>
    %cst_11 = arith.constant 0.000000e+00 : f32
    %13 = vector.broadcast %cst_11 : f32 to vector<8x32xf32>
    %14 = arith.maximumf %12, %13 : vector<8x32xf32>
    %c0_12 = arith.constant 0 : index
    %c0_13 = arith.constant 0 : index
    %15 = vector.load %arg6[%c0_12, %c0_13] : memref<32x4xf32, #tpu.memory_space<vmem>>, vector<32x4xf32>
    %cst_14 = arith.constant dense<0.000000e+00> : vector<8x4xf32>
    %16 = tpu.matmul %14, %15, %cst_14 {dimension_numbers = #tpu.dot_dimension_numbers<[1], [0], [0], [1], [0, 0, 1, 1], [], []>} : vector<8x32xf32>, vector<32x4xf32>, vector<8x4xf32> -> vector<8x4xf32>
    %c0_15 = arith.constant 0 : index
    %c0_16 = arith.constant 0 : index
    %17 = vector.load %arg7[%c0_15, %c0_16] : memref<1x4xf32, #tpu.memory_space<vmem>>, vector<1x4xf32>
    %18 = vector.broadcast %17 : vector<1x4xf32> to vector<8x4xf32>
    %19 = arith.addf %16, %18 : vector<8x4xf32>
    %c0_17 = arith.constant 0 : index
    %c0_18 = arith.constant 0 : index
    %20 = vector.load %arg8[%c0_17, %c0_18] : memref<8x4xf32, #tpu.memory_space<vmem>>, vector<8x4xf32>
    tpu.vector_store %arg8[%c0_17, %c0_18], %19 {strides = array<i32>} : memref<8x4xf32, #tpu.memory_space<vmem>>, vector<8x4xf32>,
    return
  }
  func.func @transform_0(%arg0: i32) -> (i32, i32) {
    %c0_i32 = arith.constant 0 : i32
    %c0_i32_0 = arith.constant 0 : i32
    return %arg0, %c0_i32 : i32, i32
  }
  func.func @transform_1(%arg0: i32) -> (i32, i32) {
    %c0_i32 = arith.constant 0 : i32
    %c0_i32_0 = arith.constant 0 : i32
    %c0_i32_1 = arith.constant 0 : i32
    return %c0_i32, %c0_i32_0 : i32, i32
  }
  func.func @transform_2(%arg0: i32) -> (i32, i32) {
    %c0_i32 = arith.constant 0 : i32
    %c0_i32_0 = arith.constant 0 : i32
    %c0_i32_1 = arith.constant 0 : i32
    return %c0_i32, %c0_i32_0 : i32, i32
  }
  func.func @transform_3(%arg0: i32) -> (i32, i32) {
    %c0_i32 = arith.constant 0 : i32
    %c0_i32_0 = arith.constant 0 : i32
    %c0_i32_1 = arith.constant 0 : i32
    return %c0_i32, %c0_i32_0 : i32, i32
  }
  func.func @transform_4(%arg0: i32) -> (i32, i32) {
    %c0_i32 = arith.constant 0 : i32
    %c0_i32_0 = arith.constant 0 : i32
    %c0_i32_1 = arith.constant 0 : i32
    return %c0_i32, %c0_i32_0 : i32, i32
  }
  func.func @transform_5(%arg0: i32) -> (i32, i32) {
    %c0_i32 = arith.constant 0 : i32
    %c0_i32_0 = arith.constant 0 : i32
    %c0_i32_1 = arith.constant 0 : i32
    return %c0_i32, %c0_i32_0 : i32, i32
  }
  func.func @transform_6(%arg0: i32) -> (i32, i32) {
    %c0_i32 = arith.constant 0 : i32
    %c0_i32_0 = arith.constant 0 : i32
    %c0_i32_1 = arith.constant 0 : i32
    return %c0_i32, %c0_i32_0 : i32, i32
  }
  func.func @transform_7(%arg0: i32) -> (i32, i32) {
    %c0_i32 = arith.constant 0 : i32
    %c0_i32_0 = arith.constant 0 : i32
    return %arg0, %c0_i32 : i32, i32
  }
}

</mosaic_0001>

<bundles_post_ra>
// kernel: tpu_custom_call.1
= control target key start
LH: loop header
LB: loop body
LE: loop exit
PB: predicated region body
PF: predicated region fallthrough
CT: control target
= control target key end

     0   :  { %vm32_vm0 = vcmask 64512   ;;  %vm69_vm1 = vcmask 523264   ;;  %vm102_vm2 = vcmask 261120   ;;  %vm126_vm3 = vcmask 31744   ;;  %s232_s1 = inlined_call_operand.vmem [shape: f32[8,64], index: 1, kind: input, shape index: {}]   ;;  %s233_s0 = inlined_call_operand.vmem [shape: f32[8,8], index: 0, kind: input, shape index: {}]   ;;  %s234_s3 = inlined_call_operand.vmem [shape: f32[64,32], index: 3, kind: input, shape index: {}]   ;;  %s235_s2 = inlined_call_operand.vmem [shape: f32[1,64], index: 2, kind: input, shape index: {}]   ;;  %s236_s4 = inlined_call_operand.vmem [shape: f32[1,32], index: 4, kind: input, shape index: {}]   ;;  %s237_s5 = inlined_call_operand.vmem [shape: f32[32,4], index: 5, kind: input, shape index: {}]   ;;  %s238_s6 = inlined_call_operand.vmem [shape: f32[1,4], index: 6, kind: input, shape index: {}]   ;;  %s239_s7 = inlined_call_operand.vmem [shape: f32[8,4], index: 7, kind: output, shape index: {}]  }
   0x1   :  { %v27_v0 = vld [vmem:[%s232_s1] sm:$0xff]  ;;  %v64_v2 = vld [vmem:[%s234_s3 + $0x38] sm:$0xff]  ;;  %v63_v3 = vld [vmem:[%s234_s3 + $0x30] sm:$0xff] }
   0x2   :  { %v26_v1 = vld [vmem:[%s233_s0] sm:$0xff]  ;;  %51 = vmatpush.msra.mxu0 %v27_v0  ;;  %81 = vmatpush.msra.mxu1 %v64_v2  ;;  %v62_v4 = vld [vmem:[%s234_s3 + $0x28] sm:$0xff]  ;;  %v60_v6 = vld [vmem:[%s234_s3 + $0x18] sm:$0xff] }
   0x3   :  { %132 = vmatmul.msk.f32.vlgmr.msra.gmra.mxu0 %vm32_vm0, %v26_v1  ;;  %v61_v5 = vld [vmem:[%s234_s3 + $0x20] sm:$0xff]  ;;  %v59_v7 = vld [vmem:[%s234_s3 + $0x10] sm:$0xff]  ;;  %v58_v8 = vld [vmem:[%s234_s3 + $0x8] sm:$0xff] }
   0x4   :  { %82 = vmatpush.msra.mxu1 %v63_v3  ;;  %v57_v9 = vld [vmem:[%s234_s3] sm:$0xff]  ;;  %v97_v10 = vld [vmem:[%s237_s5 + $0x18] sm:$0xff]  ;;  %v96_v15 = vld [vmem:[%s237_s5 + $0x10] sm:$0xff] }
   0x5   :  { %118 = vmatpush.msra.mxu2 %v97_v10  ;;  %v135_v11 = vld [vmem:[%s235_s2] ss:$0 sm:$0xff]  ;;  %v95_v16 = vld [vmem:[%s237_s5 + $0x8] sm:$0xff] }
   0x6   :  { %83 = vmatpush.msra.mxu1 %v62_v4  ;;  %v94_v17 = vld [vmem:[%s237_s5] sm:$0xff] }
   0x7   :  { %119 = vmatpush.msra.mxu2 %v96_v15  ;;  %v136_v18 = vld [vmem:[%s236_s4] ss:$0 sm:$0xff] }
   0x8   :  { %84 = vmatpush.msra.mxu1 %v61_v5  ;;  %v137_v22 = vld [vmem:[%s238_s6] ss:$0 sm:$0xff] }
   0x9   :  { %120 = vmatpush.msra.mxu2 %v95_v16 }
   0xa   :  { %85 = vmatpush.msra.mxu1 %v60_v6 }
   0xb   :  { %121 = vmatpush.msra.mxu2 %v94_v17 }
   0xc   :  { %86 = vmatpush.msra.mxu1 %v59_v7 }
   0xe   :  { %87 = vmatpush.msra.mxu1 %v58_v8 }
  0x10   :  { %88 = vmatpush.msra.mxu1 %v57_v9 }
  0x80   :  { %v53_v12 = vpop.f32.mrf.mxu0 }
  0x81   :  { %v54_v13 = vadd.f32 %v135_v11, %v53_v12 }
  0x83   :  { %v56_v14 = vmax.f32 %v54_v13, 0.0 }
  0x85   :  { %133 = vmatmul.msk.f32.vlgmr.msra.gmra.mxu1 %vm69_vm1, %v56_v14 }
 0x102   :  { %v90_v19 = vpop.f32.mrf.mxu1 }
 0x103   :  { %v91_v20 = vadd.f32 %v136_v18, %v90_v19 }
 0x105   :  { %v93_v21 = vmax.f32 %v91_v20, 0.0 }
 0x107   :  { %134 = vmatmul.msk.f32.vlgmr.msra.gmra.mxu2 %vm102_vm2, %v93_v21 }
 0x18a   :  { %v123_v23 = vpop.f32.mrf.mxu2 }
 0x18b   :  { %v124_v24 = vadd.f32 %v137_v22, %v123_v23 }
 0x18d   :  { %127 = vst.msk [vmem:[%s239_s7] sm:$0xff] %vm126_vm3, %v124_v24 }

</bundles_post_ra>
